<compile_context>
chip_gen: v7x
topology: tpu7x:2x2x1
jax: 0.10.0
libtpu: 0.0.40
codegen_flags: <defaults>
</compile_context>

<pallas_src>
import jax
import jax.numpy as jnp
from jax.experimental import pallas as pl
from jax.experimental.pallas import tpu as pltpu

K_HOPS = 2          # FEGNN.K (fixed by the module)
EPS = 1e-12         # torch.nn.functional.normalize default eps


# ----------------------------- kernels -------------------------------------


def _basis_resident_kernel(x_ref, p_ref, h1_ref, h2_ref, css_ref, h_scr, hb_scr):
    """Hop k of  h_{k+1} = P @ h_k - h_k  with P resident in VMEM (read once).

    x_ref   : (N, F)  f32 raw features (resident, constant index map)
    p_ref   : (N, N)  bf16 propagation operator, DMA'd from HBM exactly once
    h1_ref  : (N, F)  f32 output, h_1
    h2_ref  : (N, F)  f32 output, h_2
    css_ref : (K+1,F) f32 output, column sum-of-squares of h_0, h_1, h_2
    h_scr   : (N, F)  f32 scratch holding h_k (exact value for the subtraction)
    hb_scr  : (N, F)  bf16 scratch holding h_k (matmul RHS, cast once per hop)
    """
    k = pl.program_id(0)

    @pl.when(k == 0)
    def _():
        # h0 = F.normalize(x, dim=1), folded into the first hop.
        x = x_ref[...]
        rss = jnp.sum(x * x, axis=1, keepdims=True)
        h0 = x * jax.lax.rsqrt(jnp.maximum(rss, EPS * EPS))
        h_scr[...] = h0
        hb_scr[...] = h0.astype(jnp.bfloat16)
        css_ref[0:1, :] = jnp.sum(h0 * h0, axis=0, keepdims=True)

    h_next = jnp.dot(p_ref[...], hb_scr[...],
                     preferred_element_type=jnp.float32) - h_scr[...]
    css_k = jnp.sum(h_next * h_next, axis=0, keepdims=True)

    # K_HOPS == 2: static writes, one output per hop (all constant-index
    # resident blocks, written back to HBM after the last grid step).
    for kk, h_out in enumerate((h1_ref, h2_ref)):
        @pl.when(k == kk)
        def _(kk=kk, h_out=h_out):
            h_out[...] = h_next
            css_ref[kk + 1:kk + 2, :] = css_k

    h_scr[...] = h_next
    hb_scr[...] = h_next.astype(jnp.bfloat16)


def _prop_stream_kernel(p_ref, hb_ref, h_ref, o_ref):
    """Row tile of  h_next = P @ h - h  with P streamed from HBM.

    p_ref  : (TM, N) bf16 row tile of P (pipelined)
    hb_ref : (N, F)  bf16 full h (resident, pre-cast ONCE in the wrapper)
    h_ref  : (TM, F) f32 row tile of h (pipelined) for the subtraction
    o_ref  : (TM, F) f32 output row tile
    """
    o_ref[...] = (jnp.dot(p_ref[...], hb_ref[...],
                          preferred_element_type=jnp.float32) - h_ref[...])


def _head_kernel(x_ref, h1_ref, h2_ref, css_ref, wd0_ref, wd1_ref, wd2_ref,
                 bsum_ref, wo_ref, bo_ref, o_ref):
    """Row tile of: column-normalize the three bases (scales precomputed),
    dictionary matmuls into one accumulator, lin2, log-softmax.

    x_ref  : (TM, F) raw features (h0 is re-derived per tile: per-row op)
    css_ref: (3, F)  column sum-of-squares of h0, h1, h2 (from propagation)
    wd0    : (F, H) = wx + wlx0  (x_basis == lx_basis[0] share activations)
    wd1/2  : (F, H) = wlx1 / wlx2 ;  bsum = bx + blx0 + blx1 + blx2
    """
    x = x_ref[...]
    rss = jnp.sum(x * x, axis=1, keepdims=True)
    h0 = x * jax.lax.rsqrt(jnp.maximum(rss, EPS * EPS))

    css = css_ref[...]
    s0 = jax.lax.rsqrt(jnp.maximum(css[0:1, :], EPS * EPS))
    s1 = jax.lax.rsqrt(jnp.maximum(css[1:2, :], EPS * EPS))
    s2 = jax.lax.rsqrt(jnp.maximum(css[2:3, :], EPS * EPS))

    d = (jnp.dot(h0 * s0, wd0_ref[...], preferred_element_type=jnp.float32)
         + jnp.dot(h1_ref[...] * s1, wd1_ref[...], preferred_element_type=jnp.float32)
         + jnp.dot(h2_ref[...] * s2, wd2_ref[...], preferred_element_type=jnp.float32)
         + bsum_ref[...])
    res = jnp.dot(d, wo_ref[...], preferred_element_type=jnp.float32) + bo_ref[...]

    m = jnp.max(res, axis=1, keepdims=True)
    z = res - m
    lse = jnp.log(jnp.sum(jnp.exp(z), axis=1, keepdims=True))
    # TODO(synk): NOUT < 128 lowers to masked partial stores (vst.msk); fine at
    # this class count -- stage into a lane-dense scratch if NOUT grows.
    o_ref[...] = (z - lse).astype(o_ref.dtype)


# ----------------------------- sizing helpers --------------------------------


def _vmem_budget():
    """Per-TensorCore VMEM budget: physical capacity minus headroom for the
    compiler's internal scratch / output double-buffers.  v7x has only 64 MiB
    per core (-> ~48 MiB usable); v5e/v6e have 128 MiB (-> ~112 MiB usable)."""
    try:
        cap = int(pltpu.get_tpu_info().vmem_capacity_bytes)
    except Exception:
        cap = 64 << 20
    return max(min(cap - (16 << 20), 112 << 20), 16 << 20)


def _pick_row_tile(n, per_row_bytes, avail):
    """Largest aligned row tile dividing n whose footprint fits `avail`."""
    cands = [t for t in (1024, 512, 256, 128, 64, 32, 16, 8) if n % t == 0]
    for t in cands:
        if t * per_row_bytes <= avail:
            return t
    return cands[-1] if cands else n


# ----------------------------- wrappers --------------------------------------


def build_prop_matrix(edge_index, n):
    """Dense propagation operator  P = L - I = -(D^-1/2 A D^-1/2)  (JAX glue)."""
    src, dst = edge_index[0], edge_index[1]
    A = jnp.zeros((n, n), jnp.float32).at[src, dst].add(1.0)
    deg = jnp.sum(A, axis=1)
    dinv = jnp.where(deg > 0, jax.lax.rsqrt(jnp.where(deg > 0, deg, 1.0)), 0.0)
    # TODO(synk): for sparse graphs a block-sparse / gathered formulation
    # (PrefetchScalarGridSpec row pointers) would cut HBM traffic by the
    # sparsity factor; dense P is kept for this config.
    return -(dinv[:, None] * A * dinv[None, :])


def _basis_resident(x, p_bf16, *, vmem_limit):
    """h1, h2, css with P resident in VMEM across both hops (P read once)."""
    n, f = x.shape
    const = lambda k: (0, 0)
    return pl.pallas_call(
        _basis_resident_kernel,
        out_shape=(jax.ShapeDtypeStruct((n, f), jnp.float32),
                   jax.ShapeDtypeStruct((n, f), jnp.float32),
                   jax.ShapeDtypeStruct((K_HOPS + 1, f), jnp.float32)),
        grid_spec=pltpu.PrefetchScalarGridSpec(
            num_scalar_prefetch=0,
            grid=(K_HOPS,),
            in_specs=[pl.BlockSpec((n, f), const),      # x, resident
                      pl.BlockSpec((n, n), const)],     # P, DMA'd once
            out_specs=(pl.BlockSpec((n, f), const),
                       pl.BlockSpec((n, f), const),
                       pl.BlockSpec((K_HOPS + 1, f), const)),
            scratch_shapes=[pltpu.VMEM((n, f), jnp.float32),
                            pltpu.VMEM((n, f), jnp.bfloat16)],
        ),
        compiler_params=pltpu.CompilerParams(
            dimension_semantics=("arbitrary",),   # hop k+1 depends on hop k
            vmem_limit_bytes=vmem_limit,
        ),
    )(x, p_bf16)


def _propagate_stream(p_bf16, h, *, tm, vmem_limit, buffers=2):
    """h_next = P @ h - h, streaming P from HBM in bf16 (TM, N) row tiles."""
    n, f = h.shape
    hb = h.astype(jnp.bfloat16)          # cast ONCE per pass, not per grid step
    if buffers != 2:
        # small TM exposes DMA issue latency -> deepen the P pipeline
        p_spec = pl.BlockSpec((tm, n), lambda i: (i, 0),
                              pipeline_mode=pl.Buffered(buffers))
    else:
        p_spec = pl.BlockSpec((tm, n), lambda i: (i, 0))
    return pl.pallas_call(
        _prop_stream_kernel,
        out_shape=jax.ShapeDtypeStruct((n, f), jnp.float32),
        grid_spec=pltpu.PrefetchScalarGridSpec(
            num_scalar_prefetch=0,
            grid=(n // tm,),
            in_specs=[p_spec,                              # P row tile (pipelined)
                      pl.BlockSpec((n, f), lambda i: (0, 0)),   # bf16 h, resident
                      pl.BlockSpec((tm, f), lambda i: (i, 0))], # f32 h row tile
            out_specs=pl.BlockSpec((tm, f), lambda i: (i, 0)),
        ),
        compiler_params=pltpu.CompilerParams(
            # "parallel" shards the row tiles across v7x's two TensorCores
            # (no-op on v5e/v6e); aim for >= 2 tiles per core at large N.
            dimension_semantics=("parallel",),
            vmem_limit_bytes=vmem_limit,
        ),
    )(p_bf16, hb, h)


def _head(x, h1, h2, css, wd0, wd1, wd2, bsum, wo, bo, *, tm, vmem_limit):
    n, f = x.shape
    hid = wd0.shape[1]
    c = wo.shape[1]
    row = lambda i: (i, 0)
    const = lambda i: (0, 0)
    return pl.pallas_call(
        _head_kernel,
        out_shape=jax.ShapeDtypeStruct((n, c), jnp.float32),
        grid_spec=pltpu.PrefetchScalarGridSpec(
            num_scalar_prefetch=0,
            grid=(n // tm,),
            in_specs=[pl.BlockSpec((tm, f), row),          # x row tile
                      pl.BlockSpec((tm, f), row),          # h1 row tile
                      pl.BlockSpec((tm, f), row),          # h2 row tile
                      pl.BlockSpec((css.shape[0], f), const),
                      pl.BlockSpec((f, hid), const),
                      pl.BlockSpec((f, hid), const),
                      pl.BlockSpec((f, hid), const),
                      pl.BlockSpec((1, hid), const),
                      pl.BlockSpec((hid, c), const),
                      pl.BlockSpec((1, c), const)],
            out_specs=pl.BlockSpec((tm, c), row),
        ),
        compiler_params=pltpu.CompilerParams(
            dimension_semantics=("parallel",),
            vmem_limit_bytes=vmem_limit,
        ),
    )(x, h1, h2, css, wd0, wd1, wd2, bsum, wo, bo)


def fegnn_forward(x, edge_index, params, *, force_stream=False):
    """x: (N, F) float32, edge_index: (2, E) int32, params: dict of weights."""
    n, f = x.shape
    c = params["w2"].shape[1]

    # glue: dense propagation operator in bf16 (halves HBM traffic, native MXU
    # dtype); accumulation stays f32 inside the kernels.
    # TODO(synk): on v7x only, an fp8 (e4m3) encoding of P would halve the
    # dominant HBM stream again; not implemented here.
    p_bf16 = build_prop_matrix(edge_index, n).astype(jnp.bfloat16)

    # parameter packing (once): x_basis == lx_basis[0] so lin_x and lin_lxs[0]
    # share activations -> sum their weights; pre-sum all dictionary biases.
    wd0 = params["wx"] + params["wlx0"]
    wd1 = params["wlx1"]
    wd2 = params["wlx2"]
    b_sum = params["bx"] + params["blx0"] + params["blx1"] + params["blx2"]

    budget = _vmem_budget()

    # Conservative resident-path footprint: bf16 P (assume double-buffered),
    # x/h1/h2 double-buffered f32 blocks, f32+bf16 h scratches, slack.
    resident_bytes = 4 * n * n + 32 * n * f + 6 * n * f + (4 << 20)
    use_resident = (not force_stream) and resident_bytes <= budget

    if use_resident:
        # P read from HBM exactly once for both hops; h0/css fused in.
        h1, h2, css = _basis_resident(x, p_bf16, vmem_limit=budget)
    else:
        # Streamed fallback: P is tiled in (TM, N) row blocks and read once per
        # hop (the hop dependence makes a second read unavoidable here).
        rss = jnp.sum(x * x, axis=1, keepdims=True)
        h0 = x * jax.lax.rsqrt(jnp.maximum(rss, EPS * EPS))   # plain XLA, O(N*F)

        fixed = 4 * n * f + (2 << 20)      # resident bf16 h (x2 buffers) + slack
        per_row = 4 * n + 16 * f           # bf16 P tile (x2) + f32 h/out tiles (x2)
        tm = _pick_row_tile(n, per_row, budget - fixed)
        buffers = 3 if (tm < 256 and n // tm >= 4) else 2
        h1 = _propagate_stream(p_bf16, h0, tm=tm, vmem_limit=budget, buffers=buffers)
        h2 = _propagate_stream(p_bf16, h1, tm=tm, vmem_limit=budget, buffers=buffers)
        # TODO(synk): fusing this reduction into the streamed kernel (scratch
        # accumulator + pl.when on the last step) would force the row axis to
        # "arbitrary" and lose megacore sharding; an O(N*F) XLA reduction is
        # negligible next to the N^2 P stream.
        css = jnp.concatenate(
            [jnp.sum(h0 * h0, axis=0, keepdims=True),
             jnp.sum(h1 * h1, axis=0, keepdims=True),
             jnp.sum(h2 * h2, axis=0, keepdims=True)], axis=0)

    # head: gridded over row tiles; three partial dots (no (N, 3F) concat).
    per_row_head = 2 * (3 * f * 4 + c * 4)
    tmh = _pick_row_tile(n, per_row_head, budget - (1 << 20))
    return _head(x, h1, h2, css, wd0, wd1, wd2, b_sum,
                 params["w2"], params["b2"], tm=tmh, vmem_limit=budget)


def fegnn_reference(x, edge_index, params, prop_dtype=jnp.float32):
    """Pure-JAX reference of the forward (prop_dtype mirrors the kernel's bf16
    propagation matmuls when set to bfloat16; accumulation is always f32)."""
    n = x.shape[0]
    P = build_prop_matrix(edge_index, n)

    xr = x / jnp.maximum(jnp.sqrt(jnp.sum(x * x, axis=1, keepdims=True)), EPS)
    colnorm = lambda h: h / jnp.maximum(
        jnp.sqrt(jnp.sum(h * h, axis=0, keepdims=True)), EPS)

    Pp = P.astype(prop_dtype)
    h0 = xr
    h1 = jnp.dot(Pp, h0.astype(prop_dtype), preferred_element_type=jnp.float32) - h0
    h2 = jnp.dot(Pp, h1.astype(prop_dtype), preferred_element_type=jnp.float32) - h1

    x_basis = colnorm(xr)
    lx0, lx1, lx2 = colnorm(h0), colnorm(h1), colnorm(h2)

    d = (x_basis @ params["wx"] + params["bx"]
         + lx0 @ params["wlx0"] + params["blx0"]
         + lx1 @ params["wlx1"] + params["blx1"]
         + lx2 @ params["wlx2"] + params["blx2"])
    res = d @ params["w2"] + params["b2"]
    return jax.nn.log_softmax(res, axis=1)


if __name__ == "__main__":
    N, NIN, HID, NOUT = 128, 16, 128, 8
    key = jax.random.PRNGKey(0)
    kx, ke, *kw = jax.random.split(key, 12)

    # node features
    x = jax.random.normal(kx, (N, NIN), dtype=jnp.float32)

    # random undirected graph (no self-loops), deterministic
    E = 4 * N
    src = jax.random.randint(ke, (E,), 0, N, dtype=jnp.int32)
    dst = (src + 1 + jax.random.randint(jax.random.fold_in(ke, 1), (E,), 0, N - 1,
                                        dtype=jnp.int32)) % N
    edge_index = jnp.stack([jnp.concatenate([src, dst]),
                            jnp.concatenate([dst, src])], axis=0)

    # deterministic parameter init (weights stored as (in, out), bias as (1, out))
    def lin(k, fin, fout):
        s = 1.0 / jnp.sqrt(jnp.float32(fin))
        w = jax.random.uniform(k, (fin, fout), jnp.float32, -s, s)
        b = jax.random.uniform(jax.random.fold_in(k, 7), (1, fout), jnp.float32, -s, s)
        return w, b

    wx, bx = lin(kw[0], NIN, HID)
    wlx0, blx0 = lin(kw[1], NIN, HID)
    wlx1, blx1 = lin(kw[2], NIN, HID)
    wlx2, blx2 = lin(kw[3], NIN, HID)
    w2, b2 = lin(kw[4], HID, NOUT)
    # TODO(synk): lin_lx / lin_l / thetas exist in __init__ but are unused in
    # forward (share_lx=False, nl=0), so they are not materialized here.

    params = dict(wx=wx, bx=bx, wlx0=wlx0, blx0=blx0, wlx1=wlx1, blx1=blx1,
                  wlx2=wlx2, blx2=blx2, w2=w2, b2=b2)

    # main path: P resident in VMEM, read from HBM once for both hops
    out = jax.block_until_ready(fegnn_forward(x, edge_index, params))
    assert out.shape == (N, NOUT)

    # tight check vs a reference mirroring the kernel's bf16 propagation matmuls
    ref_bf16 = fegnn_reference(x, edge_index, params, prop_dtype=jnp.bfloat16)
    assert jnp.allclose(out, ref_bf16, atol=2e-4, rtol=2e-4), \
        "mismatch vs bf16-propagation reference (resident-P path)"

    # semantic check vs the full-f32 reference (bf16 propagation is the only
    # precision tradeoff; accumulation is f32 throughout)
    ref_f32 = fegnn_reference(x, edge_index, params, prop_dtype=jnp.float32)
    assert jnp.allclose(out, ref_f32, atol=3e-2, rtol=3e-2), \
        "mismatch vs float32 reference (resident-P path)"

    # also exercise the streamed fallback used when P does not fit in VMEM
    out_s = jax.block_until_ready(
        fegnn_forward(x, edge_index, params, force_stream=True))
    assert jnp.allclose(out_s, ref_bf16, atol=2e-4, rtol=2e-4), \
        "mismatch vs bf16-propagation reference (streamed path)"

    print("KERNEL_OK")
</pallas_src>

<mosaic_0001>
module attributes {stable_mosaic.version = 11 : i64} {
  func.func @_basis_resident_kernel(%arg0: i32, %arg1: memref<128x16xf32, #tpu.memory_space<vmem>>, %arg2: memref<128x128xbf16, #tpu.memory_space<vmem>>, %arg3: memref<128x16xf32, #tpu.memory_space<vmem>>, %arg4: memref<128x16xf32, #tpu.memory_space<vmem>>, %arg5: memref<3x16xf32, #tpu.memory_space<vmem>>, %arg6: memref<128x16xf32, #tpu.memory_space<vmem>>, %arg7: memref<128x16xbf16, #tpu.memory_space<vmem>>) attributes {dimension_semantics = [#tpu.dimension_semantics<arbitrary>], iteration_bounds = array<i64: 2>, scalar_prefetch = 0 : i64, scratch_operands = 2 : i64, tpu.core_type = #tpu.core_type<tc>, window_params = [{pipeline_mode = #tpu.pipeline_mode<synchronous>, transform_indices = @transform_0, window_bounds = array<i64: 128, 16>}, {pipeline_mode = #tpu.pipeline_mode<synchronous>, transform_indices = @transform_1, window_bounds = array<i64: 128, 128>}, {pipeline_mode = #tpu.pipeline_mode<synchronous>, transform_indices = @transform_2, window_bounds = array<i64: 128, 16>}, {pipeline_mode = #tpu.pipeline_mode<synchronous>, transform_indices = @transform_3, window_bounds = array<i64: 128, 16>}, {pipeline_mode = #tpu.pipeline_mode<synchronous>, transform_indices = @transform_4, window_bounds = array<i64: 3, 16>}]} {
    %c0_i32 = arith.constant 0 : i32
    %0 = arith.cmpi eq, %arg0, %c0_i32 : i32
    %1 = arith.extui %0 : i1 to i32
    %c0_i32_0 = arith.constant 0 : i32
    %2 = arith.cmpi ne, %1, %c0_i32_0 : i32
    scf.if %2 {
      %c0_14 = arith.constant 0 : index
      %c0_15 = arith.constant 0 : index
      %20 = vector.load %arg1[%c0_14, %c0_15] : memref<128x16xf32, #tpu.memory_space<vmem>>, vector<128x16xf32>
      %21 = arith.mulf %20, %20 : vector<128x16xf32>
      %cst_16 = arith.constant dense<0.000000e+00> : vector<128xf32>
      %22 = vector.multi_reduction <add>, %21, %cst_16 [1] : vector<128x16xf32> to vector<128xf32>
      %23 = vector.shape_cast %22 : vector<128xf32> to vector<128x1xf32>
      %cst_17 = arith.constant 1.000000e-24 : f32
      %24 = vector.broadcast %cst_17 : f32 to vector<128x1xf32>
      %25 = arith.maximumf %23, %24 : vector<128x1xf32>
      %26 = math.rsqrt %25 : vector<128x1xf32>
      %27 = vector.broadcast %26 : vector<128x1xf32> to vector<128x16xf32>
      %28 = arith.mulf %20, %27 : vector<128x16xf32>
      %c0_18 = arith.constant 0 : index
      %c0_19 = arith.constant 0 : index
      %29 = vector.load %arg6[%c0_18, %c0_19] : memref<128x16xf32, #tpu.memory_space<vmem>>, vector<128x16xf32>
      tpu.vector_store %arg6[%c0_18, %c0_19], %28 {strides = array<i32>} : memref<128x16xf32, #tpu.memory_space<vmem>>, vector<128x16xf32>,
      %30 = arith.truncf %28 : vector<128x16xf32> to vector<128x16xbf16>
      %c0_20 = arith.constant 0 : index
      %c0_21 = arith.constant 0 : index
      %31 = vector.load %arg7[%c0_20, %c0_21] : memref<128x16xbf16, #tpu.memory_space<vmem>>, vector<128x16xbf16>
      tpu.vector_store %arg7[%c0_20, %c0_21], %30 {strides = array<i32>} : memref<128x16xbf16, #tpu.memory_space<vmem>>, vector<128x16xbf16>,
      %32 = arith.mulf %28, %28 : vector<128x16xf32>
      %cst_22 = arith.constant dense<0.000000e+00> : vector<16xf32>
      %33 = vector.multi_reduction <add>, %32, %cst_22 [0] : vector<128x16xf32> to vector<16xf32>
      %34 = vector.shape_cast %33 : vector<16xf32> to vector<1x16xf32>
      %c0_23 = arith.constant 0 : index
      %c0_24 = arith.constant 0 : index
      %35 = vector.load %arg5[%c0_23, %c0_24] : memref<3x16xf32, #tpu.memory_space<vmem>>, vector<1x16xf32>
      tpu.vector_store %arg5[%c0_23, %c0_24], %34 {strides = array<i32>} : memref<3x16xf32, #tpu.memory_space<vmem>>, vector<1x16xf32>,
    } else {
    }
    %c0 = arith.constant 0 : index
    %c0_1 = arith.constant 0 : index
    %3 = vector.load %arg2[%c0, %c0_1] : memref<128x128xbf16, #tpu.memory_space<vmem>>, vector<128x128xbf16>
    %c0_2 = arith.constant 0 : index
    %c0_3 = arith.constant 0 : index
    %4 = vector.load %arg7[%c0_2, %c0_3] : memref<128x16xbf16, #tpu.memory_space<vmem>>, vector<128x16xbf16>
    %cst = arith.constant dense<0.000000e+00> : vector<128x16xf32>
    %5 = tpu.matmul %3, %4, %cst {dimension_numbers = #tpu.dot_dimension_numbers<[1], [0], [0], [1], [0, 0, 1, 1], [], []>} : vector<128x128xbf16>, vector<128x16xbf16>, vector<128x16xf32> -> vector<128x16xf32>
    %c0_4 = arith.constant 0 : index
    %c0_5 = arith.constant 0 : index
    %6 = vector.load %arg6[%c0_4, %c0_5] : memref<128x16xf32, #tpu.memory_space<vmem>>, vector<128x16xf32>
    %7 = arith.subf %5, %6 : vector<128x16xf32>
    %8 = arith.mulf %7, %7 : vector<128x16xf32>
    %cst_6 = arith.constant dense<0.000000e+00> : vector<16xf32>
    %9 = vector.multi_reduction <add>, %8, %cst_6 [0] : vector<128x16xf32> to vector<16xf32>
    %10 = vector.shape_cast %9 : vector<16xf32> to vector<1x16xf32>
    %c0_i32_7 = arith.constant 0 : i32
    %11 = arith.cmpi eq, %arg0, %c0_i32_7 : i32
    %12 = arith.extui %11 : i1 to i32
    %c0_i32_8 = arith.constant 0 : i32
    %13 = arith.cmpi ne, %12, %c0_i32_8 : i32
    scf.if %13 {
      %c0_14 = arith.constant 0 : index
      %c0_15 = arith.constant 0 : index
      %20 = vector.load %arg3[%c0_14, %c0_15] : memref<128x16xf32, #tpu.memory_space<vmem>>, vector<128x16xf32>
      tpu.vector_store %arg3[%c0_14, %c0_15], %7 {strides = array<i32>} : memref<128x16xf32, #tpu.memory_space<vmem>>, vector<128x16xf32>,
      %c1 = arith.constant 1 : index
      %c0_16 = arith.constant 0 : index
      %21 = vector.load %arg5[%c1, %c0_16] : memref<3x16xf32, #tpu.memory_space<vmem>>, vector<1x16xf32>
      tpu.vector_store %arg5[%c1, %c0_16], %10 {strides = array<i32>} : memref<3x16xf32, #tpu.memory_space<vmem>>, vector<1x16xf32>,
    } else {
    }
    %c1_i32 = arith.constant 1 : i32
    %14 = arith.cmpi eq, %arg0, %c1_i32 : i32
    %15 = arith.extui %14 : i1 to i32
    %c0_i32_9 = arith.constant 0 : i32
    %16 = arith.cmpi ne, %15, %c0_i32_9 : i32
    scf.if %16 {
      %c0_14 = arith.constant 0 : index
      %c0_15 = arith.constant 0 : index
      %20 = vector.load %arg4[%c0_14, %c0_15] : memref<128x16xf32, #tpu.memory_space<vmem>>, vector<128x16xf32>
      tpu.vector_store %arg4[%c0_14, %c0_15], %7 {strides = array<i32>} : memref<128x16xf32, #tpu.memory_space<vmem>>, vector<128x16xf32>,
      %c2 = arith.constant 2 : index
      %c0_16 = arith.constant 0 : index
      %21 = vector.load %arg5[%c2, %c0_16] : memref<3x16xf32, #tpu.memory_space<vmem>>, vector<1x16xf32>
      tpu.vector_store %arg5[%c2, %c0_16], %10 {strides = array<i32>} : memref<3x16xf32, #tpu.memory_space<vmem>>, vector<1x16xf32>,
    } else {
    }
    %c0_10 = arith.constant 0 : index
    %c0_11 = arith.constant 0 : index
    %17 = vector.load %arg6[%c0_10, %c0_11] : memref<128x16xf32, #tpu.memory_space<vmem>>, vector<128x16xf32>
    tpu.vector_store %arg6[%c0_10, %c0_11], %7 {strides = array<i32>} : memref<128x16xf32, #tpu.memory_space<vmem>>, vector<128x16xf32>,
    %18 = arith.truncf %7 : vector<128x16xf32> to vector<128x16xbf16>
    %c0_12 = arith.constant 0 : index
    %c0_13 = arith.constant 0 : index
    %19 = vector.load %arg7[%c0_12, %c0_13] : memref<128x16xbf16, #tpu.memory_space<vmem>>, vector<128x16xbf16>
    tpu.vector_store %arg7[%c0_12, %c0_13], %18 {strides = array<i32>} : memref<128x16xbf16, #tpu.memory_space<vmem>>, vector<128x16xbf16>,
    return
  }
  func.func @transform_0(%arg0: i32) -> (i32, i32) {
    %c0_i32 = arith.constant 0 : i32
    %c0_i32_0 = arith.constant 0 : i32
    %c0_i32_1 = arith.constant 0 : i32
    return %c0_i32, %c0_i32_0 : i32, i32
  }
  func.func @transform_1(%arg0: i32) -> (i32, i32) {
    %c0_i32 = arith.constant 0 : i32
    %c0_i32_0 = arith.constant 0 : i32
    %c0_i32_1 = arith.constant 0 : i32
    return %c0_i32, %c0_i32_0 : i32, i32
  }
  func.func @transform_2(%arg0: i32) -> (i32, i32) {
    %c0_i32 = arith.constant 0 : i32
    %c0_i32_0 = arith.constant 0 : i32
    %c0_i32_1 = arith.constant 0 : i32
    return %c0_i32, %c0_i32_0 : i32, i32
  }
  func.func @transform_3(%arg0: i32) -> (i32, i32) {
    %c0_i32 = arith.constant 0 : i32
    %c0_i32_0 = arith.constant 0 : i32
    %c0_i32_1 = arith.constant 0 : i32
    return %c0_i32, %c0_i32_0 : i32, i32
  }
  func.func @transform_4(%arg0: i32) -> (i32, i32) {
    %c0_i32 = arith.constant 0 : i32
    %c0_i32_0 = arith.constant 0 : i32
    %c0_i32_1 = arith.constant 0 : i32
    return %c0_i32, %c0_i32_0 : i32, i32
  }
}

</mosaic_0001>

<bundles_post_ra>
// kernel: tpu_custom_call.1
= control target key start
LH: loop header
LB: loop body
LE: loop exit
PB: predicated region body
PF: predicated region fallthrough
CT: control target
= control target key end

     0   :  { %10 = vsyncpa [#allocation5], 0  ;;  %s957_s15 = smov 0   ;;  %s1503_s0 = inlined_call_operand.vmem [shape: f32[128,16], index: 0, kind: input, shape index: {}]   ;;  %s1504_s1 = inlined_call_operand.vmem [shape: bf16[128,128], index: 1, kind: input, shape index: {}]   ;;  %s1505_s2 = inlined_call_operand.vmem [shape: f32[128,16], index: 2, kind: output, shape index: {0}]   ;;  %s1506_s3 = inlined_call_operand.vmem [shape: f32[128,16], index: 3, kind: output, shape index: {1}]   ;;  %s1507_s4 = inlined_call_operand.hbm [shape: f32[3,16], index: 4, kind: output, shape index: {2}]  }
   0x1 LB: > { %s963_s16 = sadd.s32 4294967295, %s929_s15   ;;  %p758_p0 = scmp.ge.s32.totalorder %s929_s15, 1  ;;  %s929_s15 = sphi %s957_s15, %s16_s15  }
   0x2   : > { %p143_p1 = scmp.lt.s32.totalorder %s929_s15, 3 }
   0x4   : > { %p144_p2 = pnand %p758_p0, %p143_p1 }
   0x5   : > { %p759_p3 = scmp.ne.s32.totalorder (!%p144_p2), %s963_s16, 0 }
   0x6   : > { %147 = sbr.rel (%p144_p2) target bundleno = 557 (0x22d), region = 28 }
   0xd   : > { %163 = sbr.rel (%p759_p3) target bundleno = 225 (0xe1), region = 32  ;;  %v973_v0 = vld [vmem:[%s1503_s0 + $0x10] sm:$0xff] (!%p759_p3)  ;;  %vm196_vm0 = vcmask (!%p759_p3), 130048   ;;  %v978_v1 = vld [vmem:[%s1503_s0] sm:$0xff] (!%p759_p3)  ;;  %v983_v2 = vld [vmem:[%s1503_s0 + $0x18] sm:$0xff] (!%p759_p3)  ;;  %vm378_vm1 = vcmask (!%p759_p3), 122880  }
   0xe   : > { %v182_v3 = vmul.f32 (!%p759_p3), %v973_v0, %v973_v0  ;;  %v180_v4 = vmul.f32 (!%p759_p3), %v978_v1, %v978_v1  ;;  %v183_v5 = vmul.f32 (!%p759_p3), %v983_v2, %v983_v2  ;;  %v994_v6 = vld [vmem:[%s1503_s0 + $0x8] sm:$0xff] (!%p759_p3)  ;;  %v1006_v9 = vld [vmem:[%s1503_s0 + $0x20] sm:$0xff] (!%p759_p3)  ;;  %v1019_v16 = vld [vmem:[%s1503_s0 + $0x38] sm:$0xff] (!%p759_p3) }
   0xf   : > { %v181_v7 = vmul.f32 (!%p759_p3), %v994_v6, %v994_v6  ;;  %v1001_v8 = vld [vmem:[%s1503_s0 + $0x28] sm:$0xff] (!%p759_p3)  ;;  %v184_v15 = vmul.f32 (!%p759_p3), %v1006_v9, %v1006_v9  ;;  %v1024_v17 = vld [vmem:[%s1503_s0 + $0x30] sm:$0xff] (!%p759_p3)  ;;  %v187_v20 = vmul.f32 (!%p759_p3), %v1019_v16, %v1019_v16  ;;  %v1040_v23 = vld [vmem:[%s1503_s0 + $0x40] sm:$0xff] (!%p759_p3) }
  0x10   : > { %v203_v10 = vsel (!%p759_p3), %vm196_vm0, %v182_v3, 0.0  ;;  %v197_v11 = vsel (!%p759_p3), %vm196_vm0, %v180_v4, 0.0  ;;  %v206_v12 = vsel (!%p759_p3), %vm196_vm0, %v183_v5, 0.0  ;;  %v185_v14 = vmul.f32 (!%p759_p3), %v1001_v8, %v1001_v8  ;;  %v1035_v22 = vld [vmem:[%s1503_s0 + $0x48] sm:$0xff] (!%p759_p3)  ;;  %v1051_v28 = vld [vmem:[%s1503_s0 + $0x58] sm:$0xff] (!%p759_p3)  ;;  %v1056_v29 = vld [vmem:[%s1503_s0 + $0x50] sm:$0xff] (!%p759_p3) }
  0x11   : > { %204 = vadd.xlane.f32.xlu1 (!%p759_p3), %v203_v10  ;;  %198 = vadd.xlane.f32.xlu0 (!%p759_p3), %v197_v11  ;;  %v200_v13 = vsel (!%p759_p3), %vm196_vm0, %v181_v7, 0.0  ;;  %v209_v19 = vsel (!%p759_p3), %vm196_vm0, %v184_v15, 0.0  ;;  %v186_v21 = vmul.f32 (!%p759_p3), %v1024_v17, %v1024_v17  ;;  %v218_v24 = vsel (!%p759_p3), %vm196_vm0, %v187_v20, 0.0  ;;  %v1067_v34 = vld [vmem:[%s1503_s0 + $0x68] sm:$0xff] (!%p759_p3)  ;;  %v1072_v35 = vld [vmem:[%s1503_s0 + $0x60] sm:$0xff] (!%p759_p3)  ;;  %v1083_v40 = vld [vmem:[%s1503_s0 + $0x78] sm:$0xff] (!%p759_p3) }
  0x12   : > { %v212_v18 = vsel (!%p759_p3), %vm196_vm0, %v185_v14, 0.0  ;;  %v189_v26 = vmul.f32 (!%p759_p3), %v1035_v22, %v1035_v22  ;;  %v188_v27 = vmul.f32 (!%p759_p3), %v1040_v23, %v1040_v23  ;;  %v191_v32 = vmul.f32 (!%p759_p3), %v1051_v28, %v1051_v28  ;;  %v1088_v41 = vld [vmem:[%s1503_s0 + $0x70] sm:$0xff] (!%p759_p3) }
  0x13   : > { %v215_v25 = vsel (!%p759_p3), %vm196_vm0, %v186_v21, 0.0  ;;  %v190_v33 = vmul.f32 (!%p759_p3), %v1056_v29, %v1056_v29  ;;  %v193_v38 = vmul.f32 (!%p759_p3), %v1067_v34, %v1067_v34  ;;  %v192_v39 = vmul.f32 (!%p759_p3), %v1072_v35, %v1072_v35 }
  0x14   : > { %v224_v30 = vsel %vm196_vm0, %v189_v26, 0.0  ;;  %v221_v31 = vsel %vm196_vm0, %v188_v27, 0.0  ;;  %v230_v36 = vsel %vm196_vm0, %v191_v32, 0.0  ;;  %v195_v44 = vmul.f32 %v1083_v40, %v1083_v40 }
  0x15   : > { %207 = vadd.xlane.f32.xlu1 %v206_v12  ;;  %201 = vadd.xlane.f32.xlu0 %v200_v13  ;;  %v227_v37 = vsel %vm196_vm0, %v190_v33, 0.0  ;;  %v236_v42 = vsel %vm196_vm0, %v193_v38, 0.0  ;;  %v233_v43 = vsel %vm196_vm0, %v192_v39, 0.0  ;;  %v194_v45 = vmul.f32 %v1088_v41, %v1088_v41 }
  0x16   : > { %v242_v46 = vsel %vm196_vm0, %v195_v44, 0.0 }
  0x17   : > { %v239_v47 = vsel %vm196_vm0, %v194_v45, 0.0 }
  0x19   : > { %213 = vadd.xlane.f32.xlu1 %v212_v18  ;;  %210 = vadd.xlane.f32.xlu0 %v209_v19 }
  0x1d   : > { %219 = vadd.xlane.f32.xlu1 %v218_v24  ;;  %216 = vadd.xlane.f32.xlu0 %v215_v25 }
  0x21   : > { %225 = vadd.xlane.f32.xlu1 %v224_v30  ;;  %222 = vadd.xlane.f32.xlu0 %v221_v31 }
  0x25   : > { %231 = vadd.xlane.f32.xlu1 %v230_v36  ;;  %228 = vadd.xlane.f32.xlu0 %v227_v37 }
  0x29   : > { %237 = vadd.xlane.f32.xlu1 %v236_v42  ;;  %234 = vadd.xlane.f32.xlu0 %v233_v43 }
  0x2d   : > { %243 = vadd.xlane.f32.xlu1 %v242_v46  ;;  %240 = vadd.xlane.f32.xlu0 %v239_v47 }
  0x9e   : > { %v205_v48 = vpop.xlane.xlu1 %204  ;;  %v199_v49 = vpop.xlane.xlu0 %198 }
  0x9f   : > { %v247_v50 = vmax.f32 %v205_v48, 1e-24  ;;  %v245_v51 = vmax.f32 %v199_v49, 1e-24 }
  0xa1   : > { %853 = vrsqrt.f32 %v247_v50 }
  0xa2   : > { %855 = vrsqrt.f32 %v245_v51  ;;  %v208_v52 = vpop.xlane.xlu1 %207  ;;  %v202_v53 = vpop.xlane.xlu0 %201 }
  0xa3   : > { %v248_v54 = vmax.f32 %v208_v52, 1e-24  ;;  %v246_v55 = vmax.f32 %v202_v53, 1e-24 }
  0xa5   : > { %857 = vrsqrt.f32 %v248_v54 }
  0xa6   : > { %859 = vrsqrt.f32 %v246_v55  ;;  %v214_v56 = vpop.xlane.xlu1 %213  ;;  %v211_v57 = vpop.xlane.xlu0 %210 }
  0xa7   : > { %v250_v58 = vmax.f32 %v214_v56, 1e-24  ;;  %v249_v59 = vmax.f32 %v211_v57, 1e-24 }
  0xa9   : > { %861 = vrsqrt.f32 %v250_v58 }
  0xaa   : > { %863 = vrsqrt.f32 %v249_v59  ;;  %v220_v60 = vpop.xlane.xlu1 %219  ;;  %v217_v61 = vpop.xlane.xlu0 %216 }
  0xab   : > { %v854_v62 = vpop.eup %853  ;;  %v252_v63 = vmax.f32 %v220_v60, 1e-24  ;;  %v251_v3 = vmax.f32 %v217_v61, 1e-24 }
  0xac   : > { %v856_v4 = vpop.eup %855  ;;  %v279_v5 = vmul.f32 %v854_v62, %v973_v0 }
  0xad   : > { %v277_v7 = vmul.f32 %v856_v4, %v978_v1  ;;  %865 = vrsqrt.f32 %v252_v63 }
  0xae   : > { %295 = vst.msk [vmem:[#allocation2 + $0x10] sm:$0xff] %vm196_vm0, %v279_v5  ;;  %867 = vrsqrt.f32 %v251_v3  ;;  %v226_v10 = vpop.xlane.xlu1 %225  ;;  %v223_v11 = vpop.xlane.xlu0 %222  ;;  %v327_v18 = vmul.f32 %v279_v5, %v279_v5 }
  0xaf   : > { %v858_v12 = vpop.eup %857  ;;  %293 = vst.msk [vmem:[#allocation2] sm:$0xff] %vm196_vm0, %v277_v7  ;;  %v254_v13 = vmax.f32 %v226_v10, 1e-24  ;;  %v253_v14 = vmax.f32 %v223_v11, 1e-24  ;;  %v325_v20 = vmul.f32 %v277_v7, %v277_v7 }
  0xb0   : > { %v860_v15 = vpop.eup %859  ;;  %v280_v19 = vmul.f32 %v858_v12, %v983_v2  ;;  %v344_v2 = vsel %vm196_vm0, %v327_v18, 0.0 }
  0xb1   : > { %v278_v0 = vmul.f32 %v860_v15, %v994_v6  ;;  %869 = vrsqrt.f32 %v254_v13  ;;  %v341_v36 = vsel %vm196_vm0, %v325_v20, 0.0 }
  0xb2   : > { %296 = vst.msk [vmem:[#allocation2 + $0x18] sm:$0xff] %vm196_vm0, %v280_v19  ;;  %v310_v1 = vpack.c.bf16 %v280_v19, %v279_v5  ;;  %v328_v21 = vmul.f32 %v280_v19, %v280_v19  ;;  %871 = vrsqrt.f32 %v253_v14  ;;  %v232_v24 = vpop.xlane.xlu1 %231  ;;  %v229_v25 = vpop.xlane.xlu0 %228 }
  0xb3   : > { %v862_v26 = vpop.eup %861  ;;  %294 = vst.msk [vmem:[#allocation2 + $0x8] sm:$0xff] %vm196_vm0, %v278_v0  ;;  %v309_v27 = vpack.c.bf16 %v278_v0, %v277_v7  ;;  %v326_v30 = vmul.f32 %v278_v0, %v278_v0  ;;  %v256_v31 = vmax.f32 %v232_v24, 1e-24  ;;  %v255_v32 = vmax.f32 %v229_v25, 1e-24 }
  0xb4   : > { %v864_v33 = vpop.eup %863  ;;  %318 = vst.msk [vmem:[#allocation3 + $0x8] sm:$0xff] %vm196_vm0, %v310_v1  ;;  %v282_v6 = vmul.f32 %v862_v26, %v1001_v8  ;;  %v346_v39 = vsel %vm196_vm0, %v328_v21, 0.0 }
  0xb5   : > { %317 = vst.msk [vmem:[#allocation3] sm:$0xff] %vm196_vm0, %v309_v27  ;;  %v342_v37 = vsel %vm196_vm0, %v326_v30, 0.0  ;;  %v281_v38 = vmul.f32 %v864_v33, %v1006_v9  ;;  %873 = vrsqrt.f32 %v256_v31 }
  0xb6   : > { %v343_v42 = vadd.f32 %v342_v37, %v341_v36  ;;  %298 = vst.msk [vmem:[#allocation2 + $0x28] sm:$0xff] %vm196_vm0, %v282_v6  ;;  %v330_v43 = vmul.f32 %v282_v6, %v282_v6  ;;  %875 = vrsqrt.f32 %v255_v32  ;;  %v238_v44 = vpop.xlane.xlu1 %237  ;;  %v235_v45 = vpop.xlane.xlu0 %234 }
  0xb7   : > { %v866_v46 = vpop.eup %865  ;;  %297 = vst.msk [vmem:[#allocation2 + $0x20] sm:$0xff] %vm196_vm0, %v281_v38  ;;  %v311_v8 = vpack.c.bf16 %v282_v6, %v281_v38  ;;  %v329_v47 = vmul.f32 %v281_v38, %v281_v38  ;;  %v258_v48 = vmax.f32 %v238_v44, 1e-24  ;;  %v257_v49 = vmax.f32 %v235_v45, 1e-24 }
  0xb8   : > { %v868_v50 = vpop.eup %867  ;;  %v345_v51 = vadd.f32 %v344_v2, %v343_v42  ;;  %v284_v9 = vmul.f32 %v866_v46, %v1019_v16  ;;  %v350_v54 = vsel %vm196_vm0, %v330_v43, 0.0 }
  0xb9   : > { %319 = vst.msk [vmem:[#allocation3 + $0x10] sm:$0xff] %vm196_vm0, %v311_v8  ;;  %v348_v52 = vsel %vm196_vm0, %v329_v47, 0.0  ;;  %v283_v53 = vmul.f32 %v868_v50, %v1024_v17  ;;  %877 = vrsqrt.f32 %v258_v48 }
  0xba   : > { %v347_v55 = vadd.f32 %v346_v39, %v345_v51  ;;  %300 = vst.msk [vmem:[#allocation2 + $0x38] sm:$0xff] %vm196_vm0, %v284_v9  ;;  %v332_v56 = vmul.f32 %v284_v9, %v284_v9  ;;  %879 = vrsqrt.f32 %v257_v49  ;;  %v244_v57 = vpop.xlane.xlu1 %243  ;;  %v241_v58 = vpop.xlane.xlu0 %240 }
  0xbb   : > { %v870_v59 = vpop.eup %869  ;;  %299 = vst.msk [vmem:[#allocation2 + $0x30] sm:$0xff] %vm196_vm0, %v283_v53  ;;  %v312_v16 = vpack.c.bf16 %v284_v9, %v283_v53  ;;  %v331_v60 = vmul.f32 %v283_v53, %v283_v53  ;;  %v260_v61 = vmax.f32 %v244_v57, 1e-24  ;;  %v259_v62 = vmax.f32 %v241_v58, 1e-24 }
  0xbc   : > { %v872_v63 = vpop.eup %871  ;;  %v349_v3 = vadd.f32 %v348_v52, %v347_v55  ;;  %v286_v17 = vmul.f32 %v870_v59, %v1035_v22  ;;  %v354_v11 = vsel %vm196_vm0, %v332_v56, 0.0 }
  0xbd   : > { %320 = vst.msk [vmem:[#allocation3 + $0x18] sm:$0xff] %vm196_vm0, %v312_v16  ;;  %v352_v4 = vsel %vm196_vm0, %v331_v60, 0.0  ;;  %v285_v5 = vmul.f32 %v872_v63, %v1040_v23  ;;  %881 = vrsqrt.f32 %v260_v61 }
  0xbe   : > { %v351_v7 = vadd.f32 %v350_v54, %v349_v3  ;;  %302 = vst.msk [vmem:[#allocation2 + $0x48] sm:$0xff] %vm196_vm0, %v286_v17  ;;  %883 = vrsqrt.f32 %v259_v62  ;;  %v334_v12 = vmul.f32 %v286_v17, %v286_v17 }
  0xbf   : > { %v874_v10 = vpop.eup %873  ;;  %301 = vst.msk [vmem:[#allocation2 + $0x40] sm:$0xff] %vm196_vm0, %v285_v5  ;;  %v313_v13 = vpack.c.bf16 %v286_v17, %v285_v5  ;;  %v333_v14 = vmul.f32 %v285_v5, %v285_v5 }
  0xc0   : > { %v876_v22 = vpop.eup %875  ;;  %v353_v15 = vadd.f32 %v352_v4, %v351_v7  ;;  %v288_v18 = vmul.f32 %v874_v10, %v1051_v28  ;;  %v358_v1 = vsel %vm196_vm0, %v334_v12, 0.0 }
  0xc1   : > { %321 = vst.msk [vmem:[#allocation3 + $0x20] sm:$0xff] %vm196_vm0, %v313_v13  ;;  %v356_v23 = vsel %vm196_vm0, %v333_v14, 0.0  ;;  %v287_v19 = vmul.f32 %v876_v22, %v1056_v29 }
  0xc2   : > { %v355_v20 = vadd.f32 %v354_v11, %v353_v15  ;;  %304 = vst.msk [vmem:[#allocation2 + $0x58] sm:$0xff] %vm196_vm0, %v288_v18  ;;  %v336_v21 = vmul.f32 %v288_v18, %v288_v18 }
  0xc3   : > { %v878_v0 = vpop.eup %877  ;;  %303 = vst.msk [vmem:[#allocation2 + $0x50] sm:$0xff] %vm196_vm0, %v287_v19  ;;  %v314_v24 = vpack.c.bf16 %v288_v18, %v287_v19  ;;  %v335_v25 = vmul.f32 %v287_v19, %v287_v19 }
  0xc4   : > { %v880_v26 = vpop.eup %879  ;;  %v357_v27 = vadd.f32 %v356_v23, %v355_v20  ;;  %v290_v28 = vmul.f32 %v878_v0, %v1067_v34  ;;  %v362_v33 = vsel %vm196_vm0, %v336_v21, 0.0 }
  0xc5   : > { %322 = vst.msk [vmem:[#allocation3 + $0x28] sm:$0xff] %vm196_vm0, %v314_v24  ;;  %v360_v30 = vsel %vm196_vm0, %v335_v25, 0.0  ;;  %v289_v29 = vmul.f32 %v880_v26, %v1072_v35 }
  0xc6   : > { %v359_v31 = vadd.f32 %v358_v1, %v357_v27  ;;  %306 = vst.msk [vmem:[#allocation2 + $0x68] sm:$0xff] %vm196_vm0, %v290_v28  ;;  %v338_v2 = vmul.f32 %v290_v28, %v290_v28 }
  0xc7   : > { %v882_v32 = vpop.eup %881  ;;  %305 = vst.msk [vmem:[#allocation2 + $0x60] sm:$0xff] %vm196_vm0, %v289_v29  ;;  %v315_v6 = vpack.c.bf16 %v290_v28, %v289_v29  ;;  %v337_v36 = vmul.f32 %v289_v29, %v289_v29 }
  0xc8   : > { %v884_v37 = vpop.eup %883  ;;  %v361_v38 = vadd.f32 %v360_v30, %v359_v31  ;;  %v292_v34 = vmul.f32 %v882_v32, %v1083_v40  ;;  %v366_v43 = vsel %vm196_vm0, %v338_v2, 0.0 }
  0xc9   : > { %323 = vst.msk [vmem:[#allocation3 + $0x30] sm:$0xff] %vm196_vm0, %v315_v6  ;;  %v364_v39 = vsel %vm196_vm0, %v337_v36, 0.0  ;;  %v291_v35 = vmul.f32 %v884_v37, %v1088_v41 }
  0xca   : > { %v363_v42 = vadd.f32 %v362_v33, %v361_v38  ;;  %308 = vst.msk [vmem:[#allocation2 + $0x78] sm:$0xff] %vm196_vm0, %v292_v34  ;;  %v340_v44 = vmul.f32 %v292_v34, %v292_v34 }
  0xcb   : > { %307 = vst.msk [vmem:[#allocation2 + $0x70] sm:$0xff] %vm196_vm0, %v291_v35  ;;  %v316_v45 = vpack.c.bf16 %v292_v34, %v291_v35  ;;  %v339_v46 = vmul.f32 %v291_v35, %v291_v35 }
  0xcc   : > { %v365_v8 = vadd.f32 %v364_v39, %v363_v42  ;;  %v370_v48 = vsel %vm196_vm0, %v340_v44, 0.0 }
  0xcd   : > { %324 = vst.msk [vmem:[#allocation3 + $0x38] sm:$0xff] %vm196_vm0, %v316_v45  ;;  %v368_v40 = vsel %vm196_vm0, %v339_v46, 0.0 }
  0xce   : > { %v367_v47 = vadd.f32 %v366_v43, %v365_v8 }
  0xd0   : > { %v369_v49 = vadd.f32 %v368_v40, %v367_v47 }
  0xd2   : > { %v371_v41 = vadd.f32 %v370_v48, %v369_v49 }
  0xd4   : > { %v372_v50 = vrot.slane %v371_v41, 4 }
  0xd6   : > { %v373_v51 = vadd.f32 %v372_v50, %v371_v41 }
  0xd8   : > { %v374_v9 = vrot.slane %v373_v51, 2 }
  0xda   : > { %v375_v52 = vadd.f32 %v374_v9, %v373_v51 }
  0xdc   : > { %v376_v53 = vrot.slane %v375_v52, 1 }
  0xde   : > { %v377_v54 = vadd.f32 %v376_v53, %v375_v52 }
  0xe0   : > { %379 = vst.msk [vmem:[#allocation4] sm:$0x1] %vm378_vm1, %v377_v54 }
  0xe1 PF: > { %v396_v55 = vld [vmem:[#allocation3] sm:$0xff]  ;;  %v397_v56 = vld [vmem:[#allocation3 + $0x8] sm:$0xff]  ;;  %v398_v58 = vld [vmem:[#allocation3 + $0x10] sm:$0xff]  ;;  %vm597_vm2 = vcmask 130048   ;;  %vm654_vm3 = vcmask (!%p759_p3), 122880  }
  0xe2   : > { %790 = vmatprep.subr.bf16.mxu0 %v396_v55  ;;  %822 = vmatprep.subr.bf16.mxu1 %v396_v55  ;;  %v885_v57 = vld [vmem:[%s1504_s1] sm:$0xff]   ;;  %v399_v16 = vld [vmem:[#allocation3 + $0x18] sm:$0xff]  ;;  %v401_v61 = vld [vmem:[#allocation3 + $0x28] sm:$0xff] }
  0xe3   : > { %791 = vmatpush3.bf16.msra.mxu0 %v396_v55  ;;  %830 = vmatpush3.bf16.msra.mxu1 %v396_v55  ;;  %v889_v59 = vld [vmem:[%s1504_s1 + $0x20] sm:$0xff]   ;;  %v402_v62 = vld [vmem:[#allocation3 + $0x30] sm:$0xff]  ;;  %v403_v63 = vld [vmem:[#allocation3 + $0x38] sm:$0xff] }
  0xe4   : > { %792 = vmatprep.subr.bf16.mxu0 %v397_v56  ;;  %823 = vmatprep.subr.bf16.mxu1 %v397_v56  ;;  %v400_v60 = vld [vmem:[#allocation3 + $0x20] sm:$0xff]  ;;  %v886_v3 = vld [vmem:[%s1504_s1 + $0x8] sm:$0xff]   ;;  %v887_v4 = vld [vmem:[%s1504_s1 + $0x10] sm:$0xff]  }
  0xe5   : > { %806 = vmatprep.mubr.bf16.mxu0 %v885_v57  ;;  %814 = vmatprep.mubr.bf16.mxu1 %v889_v59  ;;  %v890_v17 = vld [vmem:[%s1504_s1 + $0x28] sm:$0xff]   ;;  %v891_v5 = vld [vmem:[%s1504_s1 + $0x30] sm:$0xff]   ;;  %v888_v7 = vld [vmem:[%s1504_s1 + $0x18] sm:$0xff]  }
  0xe6   : > { %v892_v10 = vld [vmem:[%s1504_s1 + $0x38] sm:$0xff]   ;;  %v551_v11 = vld [vmem:[#allocation2 + $0x10] sm:$0xff]  ;;  %v549_v12 = vld [vmem:[#allocation2] sm:$0xff] }
  0xe7   : > { %793 = vmatpush3.bf16.msra.mxu0 %v397_v56  ;;  %831 = vmatpush3.bf16.msra.mxu1 %v397_v56  ;;  %v552_v15 = vld [vmem:[#allocation2 + $0x18] sm:$0xff]  ;;  %v550_v18 = vld [vmem:[#allocation2 + $0x8] sm:$0xff]  ;;  %v555_v29 = vld [vmem:[#allocation2 + $0x30] sm:$0xff] }
  0xe8   : > { %794 = vmatprep.subr.bf16.mxu0 %v398_v58  ;;  %824 = vmatprep.subr.bf16.mxu1 %v398_v58  ;;  %v553_v31 = vld [vmem:[#allocation2 + $0x20] sm:$0xff]  ;;  %v556_v39 = vld [vmem:[#allocation2 + $0x38] sm:$0xff]  ;;  %v554_v35 = vld [vmem:[#allocation2 + $0x28] sm:$0xff] }
  0xe9   : > { %v557_v36 = vld [vmem:[#allocation2 + $0x40] sm:$0xff]  ;;  %v558_v53 = vld [vmem:[#allocation2 + $0x48] sm:$0xff] }
  0xeb   : > { %795 = vmatpush3.bf16.msra.mxu0 %v398_v58  ;;  %832 = vmatpush3.bf16.msra.mxu1 %v398_v58  ;;  %v559_v58 = vld [vmem:[#allocation2 + $0x50] sm:$0xff] }
  0xec   : > { %796 = vmatprep.subr.bf16.mxu0 %v399_v16  ;;  %825 = vmatprep.subr.bf16.mxu1 %v399_v16 }
  0xef   : > { %797 = vmatpush3.bf16.msra.mxu0 %v399_v16  ;;  %833 = vmatpush3.bf16.msra.mxu1 %v399_v16 }
  0xf0   : > { %798 = vmatprep.subr.bf16.mxu0 %v400_v60  ;;  %826 = vmatprep.subr.bf16.mxu1 %v400_v60 }
  0xf3   : > { %799 = vmatpush3.bf16.msra.mxu0 %v400_v60  ;;  %834 = vmatpush3.bf16.msra.mxu1 %v400_v60 }
  0xf4   : > { %800 = vmatprep.subr.bf16.mxu0 %v401_v61  ;;  %827 = vmatprep.subr.bf16.mxu1 %v401_v61 }
  0xf7   : > { %801 = vmatpush3.bf16.msra.mxu0 %v401_v61  ;;  %835 = vmatpush3.bf16.msra.mxu1 %v401_v61  ;;  %v560_v61 = vld [vmem:[#allocation2 + $0x58] sm:$0xff] }
  0xf8   : > { %802 = vmatprep.subr.bf16.mxu0 %v402_v62  ;;  %828 = vmatprep.subr.bf16.mxu1 %v402_v62 }
  0xfb   : > { %803 = vmatpush3.bf16.msra.mxu0 %v402_v62  ;;  %836 = vmatpush3.bf16.msra.mxu1 %v402_v62 }
  0xfc   : > { %804 = vmatprep.subr.bf16.mxu0 %v403_v63  ;;  %829 = vmatprep.subr.bf16.mxu1 %v403_v63 }
  0xff   : > { %805 = vmatpush3.bf16.msra.mxu0 %v403_v63  ;;  %837 = vmatpush3.bf16.msra.mxu1 %v403_v63 }
 0x102   : > { %807 = vmatmul.mubr.bf16.vlgmr.msra.gmra.mrb[0].mxu0 %v886_v3  ;;  %815 = vmatmul.mubr.bf16.vlgmr.msra.gmra.mrb[0].mxu1 %v890_v17  ;;  %v561_v3 = vld [vmem:[#allocation2 + $0x60] sm:$0xff] }
 0x103   : > { %810 = vmatprep.mubr.bf16.mxu0 %v887_v4  ;;  %818 = vmatprep.mubr.bf16.mxu1 %v891_v5 }
 0x10a   : > { %811 = vmatmul.mubr.bf16.gmra.mrb[4].mxu0 %v888_v7  ;;  %819 = vmatmul.mubr.bf16.gmra.mrb[4].mxu1 %v892_v10 }
 0x1d5   : > { %v808_v13 = vpop.f32.mrb[0].mxu0  ;;  %v816_v14 = vpop.f32.mrb[0].mxu1 }
 0x1d6   : > { %v486_v22 = vpop.f32.mrb[1].mxu0  ;;  %v518_v23 = vpop.f32.mrb[1].mxu1  ;;  %v1178_v19 = vsub.f32 %v808_v13, %v551_v11  ;;  %v1223_v4 = vsub.f32 %v816_v14, %v559_v58  ;;  %v563_v14 = vld [vmem:[#allocation2 + $0x70] sm:$0xff] }
 0x1d7   : > { %v1180_v20 = vsub.f32 %v486_v22, %v549_v12  ;;  %v809_v0 = vpop.f32.mrb[2].mxu0  ;;  %v817_v1 = vpop.f32.mrb[2].mxu1  ;;  %v1201_v48 = vsub.f32 %v518_v23, %v557_v36 }
 0x1d8   : > { %v489_v21 = vpop.f32.mrb[3].mxu0  ;;  %v521_v24 = vpop.f32.mrb[3].mxu1  ;;  %v1184_v26 = vsub.f32 %v809_v0, %v552_v15  ;;  %v583_v28 = vmul.f32 %v1178_v19, %v1178_v19  ;;  %v1225_v7 = vsub.f32 %v817_v1, %v560_v61  ;;  %v562_v15 = vld [vmem:[#allocation2 + $0x68] sm:$0xff]  ;;  %640 = vst.msk [vmem:[%s1505_s2 + $0x10] sm:$0xff] (!%p759_p3), %vm597_vm2, %v1178_v19  ;;  %648 = vst.msk [vmem:[%s1505_s2 + $0x50] sm:$0xff] (!%p759_p3), %vm597_vm2, %v1223_v4 }
 0x1d9   : > { %v581_v25 = vmul.f32 %v1180_v20, %v1180_v20  ;;  %v1186_v27 = vsub.f32 %v489_v21, %v550_v18  ;;  %v589_v60 = vmul.f32 %v1201_v48, %v1201_v48  ;;  %v1220_v62 = vsub.f32 %v521_v24, %v558_v53  ;;  %638 = vst.msk [vmem:[%s1505_s2] sm:$0xff] (!%p759_p3), %vm597_vm2, %v1180_v20 }
 0x1da   : > { %v584_v33 = vmul.f32 %v1184_v26, %v1184_v26  ;;  %v601_v43 = vsel %vm597_vm2, %v583_v28, 0.0  ;;  %v591_v18 = vmul.f32 %v1223_v4, %v1223_v4  ;;  %v592_v0 = vmul.f32 %v1225_v7, %v1225_v7  ;;  %v564_v28 = vld [vmem:[#allocation2 + $0x78] sm:$0xff]  ;;  %641 = vst.msk [vmem:[%s1505_s2 + $0x18] sm:$0xff] (!%p759_p3), %vm597_vm2, %v1184_v26  ;;  %646 = vst.msk [vmem:[%s1505_s2 + $0x40] sm:$0xff] (!%p759_p3), %vm597_vm2, %v1201_v48 }
 0x1db   : > { %v582_v30 = vmul.f32 %v1186_v27, %v1186_v27  ;;  %v598_v32 = vsel %vm597_vm2, %v581_v25, 0.0  ;;  %v613_v11 = vsel %vm597_vm2, %v589_v60, 0.0  ;;  %v590_v12 = vmul.f32 %v1220_v62, %v1220_v62  ;;  %639 = vst.msk [vmem:[%s1505_s2 + $0x8] sm:$0xff] (!%p759_p3), %vm597_vm2, %v1186_v27  ;;  %647 = vst.msk [vmem:[%s1505_s2 + $0x48] sm:$0xff] (!%p759_p3), %vm597_vm2, %v1220_v62 }
 0x1dc   : > { %v603_v41 = vsel %vm597_vm2, %v584_v33, 0.0  ;;  %649 = vst.msk [vmem:[%s1505_s2 + $0x58] sm:$0xff] (!%p759_p3), %vm597_vm2, %v1225_v7 }
 0x1dd   : > { %v599_v2 = vsel %vm597_vm2, %v582_v30, 0.0  ;;  %v812_v6 = vpop.f32.mrb[4].mxu0  ;;  %v820_v37 = vpop.f32.mrb[4].mxu1  ;;  %v615_v1 = vsel %vm597_vm2, %v590_v12, 0.0  ;;  %v617_v30 = vsel %vm597_vm2, %v591_v18, 0.0 }
 0x1de   : > { %v600_v38 = vadd.f32 %v599_v2, %v598_v32  ;;  %v502_v34 = vpop.f32.mrb[5].mxu0  ;;  %v534_v42 = vpop.f32.mrb[5].mxu1  ;;  %v1197_v44 = vsub.f32 %v812_v6, %v555_v29  ;;  %v1243_v29 = vsub.f32 %v820_v37, %v563_v14  ;;  %v619_v32 = vsel %vm597_vm2, %v592_v0, 0.0 }
 0x1df   : > { %v1199_v45 = vsub.f32 %v502_v34, %v553_v31  ;;  %v813_v46 = vpop.f32.mrb[6].mxu0  ;;  %v821_v8 = vpop.f32.mrb[6].mxu1  ;;  %v1231_v13 = vsub.f32 %v534_v42, %v561_v3 }
 0x1e0   : > { %v602_v40 = vadd.f32 %v601_v43, %v600_v38  ;;  %v505_v47 = vpop.f32.mrb[7].mxu0  ;;  %v537_v49 = vpop.f32.mrb[7].mxu1  ;;  %v1206_v51 = vsub.f32 %v813_v46, %v556_v39  ;;  %v587_v54 = vmul.f32 %v1197_v44, %v1197_v44  ;;  %v1247_v2 = vsub.f32 %v821_v8, %v564_v28  ;;  %644 = vst.msk [vmem:[%s1505_s2 + $0x30] sm:$0xff] (!%p759_p3), %vm597_vm2, %v1197_v44 }
 0x1e1   : > { %v585_v50 = vmul.f32 %v1199_v45, %v1199_v45  ;;  %v1208_v9 = vsub.f32 %v505_v47, %v554_v35  ;;  %v593_v21 = vmul.f32 %v1231_v13, %v1231_v13  ;;  %v1240_v24 = vsub.f32 %v537_v49, %v562_v15  ;;  %642 = vst.msk [vmem:[%s1505_s2 + $0x20] sm:$0xff] (!%p759_p3), %vm597_vm2, %v1199_v45 }
 0x1e2   : > { %v604_v52 = vadd.f32 %v603_v41, %v602_v40  ;;  %v588_v59 = vmul.f32 %v1206_v51, %v1206_v51  ;;  %v609_v17 = vsel %vm597_vm2, %v587_v54, 0.0  ;;  %v595_v38 = vmul.f32 %v1243_v29, %v1243_v29  ;;  %645 = vst.msk [vmem:[%s1505_s2 + $0x38] sm:$0xff] (!%p759_p3), %vm597_vm2, %v1206_v51  ;;  %650 = vst.msk [vmem:[%s1505_s2 + $0x60] sm:$0xff] (!%p759_p3), %vm597_vm2, %v1231_v13 }
 0x1e3   : > { %v605_v55 = vsel %vm597_vm2, %v585_v50, 0.0  ;;  %v586_v56 = vmul.f32 %v1208_v9, %v1208_v9  ;;  %v621_v33 = vsel %vm597_vm2, %v593_v21, 0.0  ;;  %v594_v6 = vmul.f32 %v1240_v24, %v1240_v24  ;;  %643 = vst.msk [vmem:[%s1505_s2 + $0x28] sm:$0xff] (!%p759_p3), %vm597_vm2, %v1208_v9  ;;  %651 = vst.msk [vmem:[%s1505_s2 + $0x68] sm:$0xff] (!%p759_p3), %vm597_vm2, %v1240_v24 }
 0x1e4   : > { %v606_v57 = vadd.f32 %v605_v55, %v604_v52  ;;  %v611_v10 = vsel %vm597_vm2, %v588_v59, 0.0  ;;  %v596_v39 = vmul.f32 %v1247_v2, %v1247_v2  ;;  %v625_v42 = vsel %vm597_vm2, %v595_v38, 0.0  ;;  %652 = vst.msk [vmem:[%s1505_s2 + $0x70] sm:$0xff] (!%p759_p3), %vm597_vm2, %v1243_v29  ;;  %653 = vst.msk [vmem:[%s1505_s2 + $0x78] sm:$0xff] (!%p759_p3), %vm597_vm2, %v1247_v2 }
 0x1e5   : > { %v607_v16 = vsel %vm597_vm2, %v586_v56, 0.0  ;;  %v623_v37 = vsel %vm597_vm2, %v594_v6, 0.0 }
 0x1e6   : > { %v608_v63 = vadd.f32 %v607_v16, %v606_v57  ;;  %v627_v46 = vsel %vm597_vm2, %v596_v39, 0.0 }
 0x1e8   : > { %v610_v5 = vadd.f32 %v609_v17, %v608_v63 }
 0x1ea   : > { %v612_v22 = vadd.f32 %v611_v10, %v610_v5 }
 0x1ec   : > { %v614_v23 = vadd.f32 %v613_v11, %v612_v22 }
 0x1ee   : > { %v616_v25 = vadd.f32 %v615_v1, %v614_v23 }
 0x1f0   : > { %v618_v31 = vadd.f32 %v617_v30, %v616_v25 }
 0x1f2   : > { %v620_v36 = vadd.f32 %v619_v32, %v618_v31 }
 0x1f4   : > { %v622_v34 = vadd.f32 %v621_v33, %v620_v36 }
 0x1f6   : > { %v624_v35 = vadd.f32 %v623_v37, %v622_v34 }
 0x1f8   : > { %v626_v43 = vadd.f32 %v625_v42, %v624_v35 }
 0x1fa   : > { %v628_v8 = vadd.f32 %v627_v46, %v626_v43 }
 0x1fc   : > { %v629_v40 = vrot.slane %v628_v8, 4 }
 0x1fe   : > { %v630_v47 = vadd.f32 %v629_v40, %v628_v8 }
 0x200   : > { %v631_v49 = vrot.slane %v630_v47, 2  ;;  %637 = sbr.rel (%p759_p3) target bundleno = 521 (0x209), region = 36 }
 0x202   : > { %v632_v41 = vadd.f32 %v631_v49, %v630_v47 }
 0x204   : > { %v633_v50 = vrot.slane %v632_v41, 1 }
 0x206   : > { %v634_v52 = vadd.f32 %v633_v50, %v632_v41 }
 0x208   : > { %655 = vst.msk [vmem:[#allocation4 + $0x1] sm:$0x1] %vm654_vm3, %v634_v52 }
 0x209 PF: > { %p769_p4 = scmp.ne.s32.totalorder %s963_s16, 1 }
 0x20a   : > { %660 = vst.msk [vmem:[%s1506_s3] sm:$0xff] (!%p769_p4), %vm597_vm2, %v1180_v20  ;;  %661 = vst.msk [vmem:[%s1506_s3 + $0x8] sm:$0xff] (!%p769_p4), %vm597_vm2, %v1186_v27  ;;  %vm676_vm4 = vcmask (!%p769_p4), 122880  }
 0x20b   : > { %659 = sbr.rel (%p769_p4) target bundleno = 531 (0x213), region = 40  ;;  %662 = vst.msk [vmem:[%s1506_s3 + $0x10] sm:$0xff] (!%p769_p4), %vm597_vm2, %v1178_v19  ;;  %663 = vst.msk [vmem:[%s1506_s3 + $0x18] sm:$0xff] (!%p769_p4), %vm597_vm2, %v1184_v26 }
 0x20c   : > { %664 = vst.msk [vmem:[%s1506_s3 + $0x20] sm:$0xff] (!%p769_p4), %vm597_vm2, %v1199_v45  ;;  %665 = vst.msk [vmem:[%s1506_s3 + $0x28] sm:$0xff] (!%p769_p4), %vm597_vm2, %v1208_v9 }
 0x20d   : > { %666 = vst.msk [vmem:[%s1506_s3 + $0x30] sm:$0xff] (!%p769_p4), %vm597_vm2, %v1197_v44  ;;  %667 = vst.msk [vmem:[%s1506_s3 + $0x38] sm:$0xff] (!%p769_p4), %vm597_vm2, %v1206_v51 }
 0x20e   : > { %668 = vst.msk [vmem:[%s1506_s3 + $0x40] sm:$0xff] (!%p769_p4), %vm597_vm2, %v1201_v48  ;;  %669 = vst.msk [vmem:[%s1506_s3 + $0x48] sm:$0xff] (!%p769_p4), %vm597_vm2, %v1220_v62 }
 0x20f   : > { %670 = vst.msk [vmem:[%s1506_s3 + $0x50] sm:$0xff] (!%p769_p4), %vm597_vm2, %v1223_v4  ;;  %671 = vst.msk [vmem:[%s1506_s3 + $0x58] sm:$0xff] (!%p769_p4), %vm597_vm2, %v1225_v7 }
 0x210   : > { %672 = vst.msk [vmem:[%s1506_s3 + $0x60] sm:$0xff] (!%p769_p4), %vm597_vm2, %v1231_v13  ;;  %673 = vst.msk [vmem:[%s1506_s3 + $0x68] sm:$0xff] (!%p769_p4), %vm597_vm2, %v1240_v24 }
 0x211   : > { %674 = vst.msk [vmem:[%s1506_s3 + $0x70] sm:$0xff] (!%p769_p4), %vm597_vm2, %v1243_v29  ;;  %675 = vst.msk [vmem:[%s1506_s3 + $0x78] sm:$0xff] (!%p769_p4), %vm597_vm2, %v1247_v2 }
 0x212   : > { %677 = vst.msk [vmem:[#allocation4 + $0x2] sm:$0x1] %vm676_vm4, %v634_v52 }
 0x213 PF: > { %678 = vst.msk [vmem:[#allocation2] sm:$0xff] %vm597_vm2, %v1180_v20  ;;  %679 = vst.msk [vmem:[#allocation2 + $0x8] sm:$0xff] %vm597_vm2, %v1186_v27  ;;  %v694_v53 = vpack.c.bf16 %v1186_v27, %v1180_v20  ;;  %v695_v54 = vpack.c.bf16 %v1184_v26, %v1178_v19  ;;  %v696_v55 = vpack.c.bf16 %v1208_v9, %v1199_v45  ;;  %p842_p5 = scmp.eq.s32.totalorder %s963_s16, 1  ;;  %s931_s7 = smov [#allocation4]  }
 0x214   : > { %680 = vst.msk [vmem:[#allocation2 + $0x10] sm:$0xff] %vm597_vm2, %v1178_v19  ;;  %681 = vst.msk [vmem:[#allocation2 + $0x18] sm:$0xff] %vm597_vm2, %v1184_v26  ;;  %v697_v56 = vpack.c.bf16 %v1206_v51, %v1197_v44  ;;  %v698_v57 = vpack.c.bf16 %v1220_v62, %v1201_v48  ;;  %v699_v58 = vpack.c.bf16 %v1225_v7, %v1223_v4  ;;  %s723_s8 = sshll.u32 %s931_s7, 4  ;;  %s724_s8 = int_to_ptr.vmem [resolvable:$true] %s723_s8 }
 0x215   : > { %682 = vst.msk [vmem:[#allocation2 + $0x20] sm:$0xff] %vm597_vm2, %v1199_v45  ;;  %683 = vst.msk [vmem:[#allocation2 + $0x28] sm:$0xff] %vm597_vm2, %v1208_v9  ;;  %v700_v20 = vpack.c.bf16 %v1240_v24, %v1231_v13  ;;  %v701_v19 = vpack.c.bf16 %v1247_v2, %v1243_v29  ;;  %s893_s9 = scalar_lea.vmem %s724_s8, 64  ;;  %p900_p9 = scmp.lt.s32.totalorder %s724_s8, %s724_s8 }
 0x216   : > { %684 = vst.msk [vmem:[#allocation2 + $0x30] sm:$0xff] %vm597_vm2, %v1197_v44  ;;  %685 = vst.msk [vmem:[#allocation2 + $0x38] sm:$0xff] %vm597_vm2, %v1206_v51  ;;  %p894_p6 = scmp.ne.s32.totalorder %s724_s8, %s893_s9  ;;  %p901_p10 = scmp.lt.s32.totalorder %s893_s9, %s893_s9 }
 0x217   : > { %686 = vst.msk [vmem:[#allocation2 + $0x40] sm:$0xff] %vm597_vm2, %v1201_v48  ;;  %687 = vst.msk [vmem:[#allocation2 + $0x48] sm:$0xff] %vm597_vm2, %v1220_v62 }
 0x218   : > { %688 = vst.msk [vmem:[#allocation2 + $0x50] sm:$0xff] %vm597_vm2, %v1223_v4  ;;  %689 = vst.msk [vmem:[#allocation2 + $0x58] sm:$0xff] %vm597_vm2, %v1225_v7  ;;  %p895_p7 = pnand %p894_p6, %p842_p5  ;;  %p902_p11 = por %p901_p10, %p900_p9 }
 0x219   : > { %690 = vst.msk [vmem:[#allocation2 + $0x60] sm:$0xff] %vm597_vm2, %v1231_v13  ;;  %691 = vst.msk [vmem:[#allocation2 + $0x68] sm:$0xff] %vm597_vm2, %v1240_v24 }
 0x21a   : > { %692 = vst.msk [vmem:[#allocation2 + $0x70] sm:$0xff] %vm597_vm2, %v1243_v29  ;;  %693 = vst.msk [vmem:[#allocation2 + $0x78] sm:$0xff] %vm597_vm2, %v1247_v2  ;;  %p896_p8 = pneg %p895_p7 }
 0x21b   : > { %702 = vst.msk [vmem:[#allocation3] sm:$0xff] %vm597_vm2, %v694_v53  ;;  %703 = vst.msk [vmem:[#allocation3 + $0x8] sm:$0xff] %vm597_vm2, %v695_v54 }
 0x21c   : > { %704 = vst.msk [vmem:[#allocation3 + $0x10] sm:$0xff] %vm597_vm2, %v696_v55  ;;  %705 = vst.msk [vmem:[#allocation3 + $0x18] sm:$0xff] %vm597_vm2, %v697_v56  ;;  %p903_p12 = pnand %p902_p11, %p896_p8 }
 0x21d   : > { %706 = vst.msk [vmem:[#allocation3 + $0x20] sm:$0xff] %vm597_vm2, %v698_v57  ;;  %707 = vst.msk [vmem:[#allocation3 + $0x28] sm:$0xff] %vm597_vm2, %v699_v58 }
 0x21e   : > { %708 = vst.msk [vmem:[#allocation3 + $0x30] sm:$0xff] %vm597_vm2, %v700_v20  ;;  %709 = vst.msk [vmem:[#allocation3 + $0x38] sm:$0xff] %vm597_vm2, %v701_v19 }
 0x21f   : > { %906 = shalt.err (!%p903_p12)
}
 0x220   : > { %s907_s12 = scalar_lea.hbm %s1507_s4, 64 }
 0x221   : > { %p908_p13 = scmp.ne.s32.totalorder %s1507_s4, %s907_s12  ;;  %p913_p2 = scmp.lt.u32.totalorder %s907_s12, %s1507_s4 }
 0x223   : > { %p909_p0 = pnand %p908_p13, %p842_p5 }
 0x225   : > { %p910_p1 = pneg %p909_p0 }
 0x227   : > { %p915_p3 = pnand %p913_p2, %p910_p1 }
 0x229   : > { %918 = shalt.err (!%p915_p3)
}
 0x22a   : > { %839 = dma.vmem_to_hbm [thread:$0]  (%p842_p5), %s724_s8, 64, %s1507_s4, [#allocation5]  }
 0x22b   : > { %924 = dma.done.wait (%p842_p5), [#allocation5], 64  }
 0x22c   : > { %926 = vsyncadd (%p842_p5), [#allocation5], 4294967232 }
 0x22d PF: > { %s16_s15 = sadd.s32 1, %s929_s15  }
 0x22e   : > { %p13_p4 = scmp.ge.s32.totalorder %s16_s15, 4  }
 0x230   :  { %15 = sbr.rel (!%p13_p4) target bundleno = 1 (0x1), region = 80 }
 0x237   :  { %742 = vsyncpa [#allocation5], 1 }
 0x238   :  { %744 = vsyncpa [#allocation5 + $0x1], 1 }

</bundles_post_ra>
